<compile_context>
chip_gen: v5e
topology: v5e:2x2
jax: 0.10.0
libtpu: 0.0.40
codegen_flags: <defaults>
</compile_context>

<pallas_src>
import jax
import jax.numpy as jnp
from jax.experimental import pallas as pl
from jax.experimental.pallas import tpu as pltpu


def fused_local_encoder_kernel(
    node_smem,   # (N_sub,)   int32 SMEM  — node ids for the row-gather DMAs
    node_vmem,   # (N_sub, 1) int32 VMEM  — node ids for the one-hot column select
    adj_hbm,     # (N_g, N_g) f32   HBM   — full weighted adjacency (dst, src)
    feat_ref,    # (N_sub, F) bf16  VMEM  — sub_feature
    w1t_ref,     # (F, F)     bf16  VMEM  — layer-1 weight, pre-transposed (F_in, F_out)
    w2t_ref,     # (F, F)     bf16  VMEM  — layer-2 weight, pre-transposed
    vec_ref,     # (8, F)     f32   VMEM  — rows: b1, g1, be1, b2, g2, be2, pad, pad
    o_ref,       # (N_sub, F) f32   VMEM
    rows_buf,    # scratch VMEM (N_sub, N_g) f32 — gathered adjacency rows
    sem,         # scratch DMA semaphores (N_sub,)
):
    n_sub, _ = feat_ref.shape
    n_graph = rows_buf.shape[1]

    # ---- gather the n_sub selected adjacency rows from HBM (manual DMA) -----
    # rows_buf[i, :] = adj_full[node[i], :]
    copies = []
    for i in range(n_sub):
        cp = pltpu.make_async_copy(
            adj_hbm.at[pl.ds(node_smem[i], 1)],
            rows_buf.at[pl.ds(i, 1)],
            sem.at[i],
        )
        cp.start()
        copies.append(cp)

    # One-hot column selector S[i, j] = 1 iff node[i] == j (bf16 MXU operand);
    # built while the row DMAs are in flight.
    col_ids = jax.lax.broadcasted_iota(jnp.int32, (n_sub, n_graph), 1)
    s = (node_vmem[...] == col_ids).astype(jnp.bfloat16)

    for cp in copies:
        cp.wait()

    # A_sub[i, j] = adj[node[i], node[j]]  ==  rows @ S^T  (column select only).
    a_sub = jax.lax.dot_general(
        rows_buf[...].astype(jnp.bfloat16), s,
        (((1,), (1,)), ((), ())),
        preferred_element_type=jnp.float32,
    ).astype(jnp.bfloat16)

    vecs = vec_ref[...]
    inv_n = 1.0 / n_sub

    def gcn_layer(h_bf16, wt_ref, b, g, be, out_dtype):
        # message/reduce: agg[v] = sum_{u -> v} w_uv * h[u]  ==  A_sub @ H
        agg = jnp.dot(a_sub, h_bf16, preferred_element_type=jnp.float32)
        # nn.Linear (weight pre-transposed + pre-cast at init)
        z = jnp.dot(agg.astype(jnp.bfloat16), wt_ref[...],
                    preferred_element_type=jnp.float32) + b
        # ReLU
        r = jnp.maximum(z, 0.0)
        # BatchNorm1d: training-mode batch stats, two-pass biased var, eps=1e-5
        mean = jnp.sum(r, axis=0, keepdims=True) * inv_n
        c = r - mean
        var = jnp.sum(c * c, axis=0, keepdims=True) * inv_n
        y = c * jax.lax.rsqrt(var + 1e-5) * g + be
        return y.astype(out_dtype)

    # Layer 1 result stays in VMEM as bf16 (MXU-ready for layer 2's aggregation).
    h1 = gcn_layer(feat_ref[...], w1t_ref,
                   vecs[0:1], vecs[1:2], vecs[2:3], jnp.bfloat16)
    o_ref[...] = gcn_layer(h1, w2t_ref,
                           vecs[3:4], vecs[4:5], vecs[5:6], o_ref.dtype)


def fused_local_encoder(adj_full, node, sub_feature, params):
    n_sub, f = sub_feature.shape
    n_graph = adj_full.shape[0]
    w1t, w2t, vecs = params["w1t"], params["w2t"], params["vecs"]

    flops = (
        2 * n_sub * n_sub * n_graph                            # column-select matmul
        + 2 * (2 * n_sub * n_sub * f + 2 * n_sub * f * f)      # two GCN layers
    )
    vmem_bytes = (
        n_sub * n_graph * 4        # gathered adjacency rows (scratch)
        + n_sub * f * 2            # features (bf16)
        + 2 * f * f * 2            # weights (bf16)
        + 8 * f * 4                # packed bias/gamma/beta vectors
        + n_sub * f * 4            # output
        + n_sub * 4 * 2            # node ids (SMEM + VMEM copies)
    )
    bytes_accessed = int(vmem_bytes + n_sub * n_graph * 4)     # + HBM row gather
    vmem_limit = int(min(max(4 * vmem_bytes + (2 << 20), 8 << 20), 64 << 20))

    return pl.pallas_call(
        fused_local_encoder_kernel,
        out_shape=jax.ShapeDtypeStruct((n_sub, f), jnp.float32),
        in_specs=[
            pl.BlockSpec(memory_space=pltpu.MemorySpace.SMEM),   # node ids (scalars)
            pl.BlockSpec(memory_space=pltpu.MemorySpace.VMEM),   # node ids (vector)
            pl.BlockSpec(memory_space=pl.ANY),                   # adjacency stays in HBM
            pl.BlockSpec(memory_space=pltpu.MemorySpace.VMEM),   # features (bf16)
            pl.BlockSpec(memory_space=pltpu.MemorySpace.VMEM),   # w1t (bf16)
            pl.BlockSpec(memory_space=pltpu.MemorySpace.VMEM),   # w2t (bf16)
            pl.BlockSpec(memory_space=pltpu.MemorySpace.VMEM),   # packed vectors
        ],
        out_specs=pl.BlockSpec(memory_space=pltpu.MemorySpace.VMEM),
        scratch_shapes=[
            pltpu.VMEM((n_sub, n_graph), jnp.float32),
            pltpu.SemaphoreType.DMA((n_sub,)),
        ],
        compiler_params=pltpu.CompilerParams(vmem_limit_bytes=vmem_limit),
        cost_estimate=pl.CostEstimate(
            flops=flops, transcendentals=0, bytes_accessed=bytes_accessed
        ),
    )(
        node.astype(jnp.int32),
        node.reshape(n_sub, 1).astype(jnp.int32),
        adj_full.astype(jnp.float32),
        sub_feature.astype(jnp.bfloat16),
        w1t, w2t, vecs,
    )


def local_encoder_forward(adj_full, node_pair, node_features, params, out_dim):
    batch, n_node, pair, aspect, h = node_features.shape

    # sub_feature = cat([nf[:,0,0].unsqueeze(1), nf[:,:,-1]], dim=1).view(-1, aspect*h)
    sub_feature = jnp.concatenate(
        [node_features[:, 0, 0, :, :][:, None], node_features[:, :, -1, :, :]],
        axis=1,
    ).reshape(-1, aspect * h)

    # node = cat([np[:,0,0].unsqueeze(1), np[:,:,-1]], dim=1).view(-1)
    node = jnp.concatenate(
        [node_pair[:, 0, 0][:, None], node_pair[:, :, -1]], axis=1
    ).reshape(-1)

    # TODO(synk): DGL sparse-graph subgraph/edge storage has no Pallas equivalent;
    # the weighted subgraph is realized as a dense adjacency row-gather + one-hot
    # column select, and repeated node ids duplicate rows/cols (verify vs. DGL
    # subgraph semantics for duplicates / BatchNorm statistics).
    h2 = fused_local_encoder(adj_full, node, sub_feature, params)

    return h2.reshape(batch, n_node + 1, aspect, out_dim)[:, 0, :, :]


def _xavier_normal(key, shape):
    fan_out, fan_in = shape
    std = (2.0 / (fan_in + fan_out)) ** 0.5
    return std * jax.random.normal(key, shape, jnp.float32)


def make_local_encoder_params(key, dim):
    k1w, k1b, k2w, k2b = jax.random.split(key, 4)
    bound = 1.0 / (dim ** 0.5)
    w1 = _xavier_normal(k1w, (dim, dim))                      # nn.init.xavier_normal_
    w2 = _xavier_normal(k2w, (dim, dim))
    b1 = jax.random.uniform(k1b, (dim,), jnp.float32, -bound, bound)
    b2 = jax.random.uniform(k2b, (dim,), jnp.float32, -bound, bound)
    gamma = jnp.ones((dim,), jnp.float32)                     # BatchNorm1d weight
    beta = jnp.zeros((dim,), jnp.float32)                     # BatchNorm1d bias
    zero = jnp.zeros((dim,), jnp.float32)
    # Pack all six per-layer (F,) vectors into ONE (8, F) f32 operand
    # (1 DMA descriptor / 1 padded tile instead of 6).
    vecs = jnp.stack([b1, gamma, beta, b2, gamma, beta, zero, zero], axis=0)
    return {
        "w1t": w1.T.astype(jnp.bfloat16),   # (F_in, F_out), bf16 for the MXU
        "w2t": w2.T.astype(jnp.bfloat16),
        "vecs": vecs,
    }


if __name__ == "__main__":
    key = jax.random.PRNGKey(0)
    ks = jax.random.split(key, 6)

    # shapes implied by the forward: node_features (B, n_node, pair, aspect, h)
    # and the final view requires in_dim == aspect * out_dim with h == out_dim.
    batch, n_node, pair, aspect, h = 2, 3, 2, 4, 32
    in_dim = aspect * h        # 128
    out_dim = h                # 32
    num_graph_nodes = 16

    node_features = jax.random.normal(
        ks[0], (batch, n_node, pair, aspect, h), jnp.float32
    )
    node_pair = jax.random.randint(
        ks[1], (batch, n_node, pair), 0, num_graph_nodes, dtype=jnp.int32
    )

    # synthetic weighted graph: adj_full[v, u] = weight of edge u -> v (0 if no edge)
    w_raw = jax.random.uniform(ks[2], (num_graph_nodes, num_graph_nodes), jnp.float32)
    mask = (
        jax.random.uniform(ks[3], (num_graph_nodes, num_graph_nodes)) < 0.4
    ).astype(jnp.float32)
    adj_full = w_raw * mask

    params = make_local_encoder_params(ks[4], in_dim)

    out = local_encoder_forward(adj_full, node_pair, node_features, params, out_dim)
    out = jax.block_until_ready(out)

    assert out.shape == (batch, aspect, out_dim), out.shape
    assert jnp.all(jnp.isfinite(out))
    print("KERNEL_OK")
</pallas_src>

<mosaic_0001>
module attributes {stable_mosaic.version = 11 : i64} {
  func.func @fused_local_encoder_kernel(%arg0: memref<8xi32, #tpu.memory_space<smem>>, %arg1: memref<8x1xi32, #tpu.memory_space<vmem>>, %arg2: memref<16x16xf32, #tpu.memory_space<any>>, %arg3: memref<8x128xbf16, #tpu.memory_space<vmem>>, %arg4: memref<128x128xbf16, #tpu.memory_space<vmem>>, %arg5: memref<128x128xbf16, #tpu.memory_space<vmem>>, %arg6: memref<8x128xf32, #tpu.memory_space<vmem>>, %arg7: memref<8x128xf32, #tpu.memory_space<vmem>>, %arg8: memref<8x16xf32, #tpu.memory_space<vmem>>, %arg9: memref<8x!tpu.dma_semaphore, #tpu.memory_space<semaphore_mem>>) attributes {dimension_semantics = [], scalar_prefetch = 0 : i64, scratch_operands = 2 : i64, tpu.core_type = #tpu.core_type<tc>} {
    %c0 = arith.constant 0 : index
    %0 = memref.load %arg0[%c0] : memref<8xi32, #tpu.memory_space<smem>>
    %c0_i32 = arith.constant 0 : i32
    %c0_i32_0 = arith.constant 0 : i32
    %1 = tpu.memref_slice %arg2[%0, %c0_i32_0] : memref<16x16xf32, #tpu.memory_space<any>> -> memref<1x16xf32, #tpu.memory_space<any>>
    %c0_i32_1 = arith.constant 0 : i32
    %c0_i32_2 = arith.constant 0 : i32
    %2 = tpu.memref_slice %arg8[%c0_i32_1, %c0_i32_2] : memref<8x16xf32, #tpu.memory_space<vmem>> -> memref<1x16xf32, #tpu.memory_space<vmem>>
    %3 = tpu.memref_slice %arg9[%c0_i32] : memref<8x!tpu.dma_semaphore, #tpu.memory_space<semaphore_mem>> -> memref<1x!tpu.dma_semaphore, #tpu.memory_space<semaphore_mem>>
    %4 = tpu.memref_squeeze %3 : memref<1x!tpu.dma_semaphore, #tpu.memory_space<semaphore_mem>> -> memref<!tpu.dma_semaphore, #tpu.memory_space<semaphore_mem>>
    tpu.enqueue_dma source(%1 : memref<1x16xf32, #tpu.memory_space<any>>) target(%2 : memref<1x16xf32, #tpu.memory_space<vmem>>) target_semaphore(%4 : memref<!tpu.dma_semaphore, #tpu.memory_space<semaphore_mem>>)
    %c1 = arith.constant 1 : index
    %5 = memref.load %arg0[%c1] : memref<8xi32, #tpu.memory_space<smem>>
    %c1_i32 = arith.constant 1 : i32
    %c0_i32_3 = arith.constant 0 : i32
    %6 = tpu.memref_slice %arg2[%5, %c0_i32_3] : memref<16x16xf32, #tpu.memory_space<any>> -> memref<1x16xf32, #tpu.memory_space<any>>
    %c1_i32_4 = arith.constant 1 : i32
    %c0_i32_5 = arith.constant 0 : i32
    %7 = tpu.memref_slice %arg8[%c1_i32_4, %c0_i32_5] : memref<8x16xf32, #tpu.memory_space<vmem>> -> memref<1x16xf32, #tpu.memory_space<vmem>>
    %8 = tpu.memref_slice %arg9[%c1_i32] : memref<8x!tpu.dma_semaphore, #tpu.memory_space<semaphore_mem>> -> memref<1x!tpu.dma_semaphore, #tpu.memory_space<semaphore_mem>>
    %9 = tpu.memref_squeeze %8 : memref<1x!tpu.dma_semaphore, #tpu.memory_space<semaphore_mem>> -> memref<!tpu.dma_semaphore, #tpu.memory_space<semaphore_mem>>
    tpu.enqueue_dma source(%6 : memref<1x16xf32, #tpu.memory_space<any>>) target(%7 : memref<1x16xf32, #tpu.memory_space<vmem>>) target_semaphore(%9 : memref<!tpu.dma_semaphore, #tpu.memory_space<semaphore_mem>>)
    %c2 = arith.constant 2 : index
    %10 = memref.load %arg0[%c2] : memref<8xi32, #tpu.memory_space<smem>>
    %c2_i32 = arith.constant 2 : i32
    %c0_i32_6 = arith.constant 0 : i32
    %11 = tpu.memref_slice %arg2[%10, %c0_i32_6] : memref<16x16xf32, #tpu.memory_space<any>> -> memref<1x16xf32, #tpu.memory_space<any>>
    %c2_i32_7 = arith.constant 2 : i32
    %c0_i32_8 = arith.constant 0 : i32
    %12 = tpu.memref_slice %arg8[%c2_i32_7, %c0_i32_8] : memref<8x16xf32, #tpu.memory_space<vmem>> -> memref<1x16xf32, #tpu.memory_space<vmem>>
    %13 = tpu.memref_slice %arg9[%c2_i32] : memref<8x!tpu.dma_semaphore, #tpu.memory_space<semaphore_mem>> -> memref<1x!tpu.dma_semaphore, #tpu.memory_space<semaphore_mem>>
    %14 = tpu.memref_squeeze %13 : memref<1x!tpu.dma_semaphore, #tpu.memory_space<semaphore_mem>> -> memref<!tpu.dma_semaphore, #tpu.memory_space<semaphore_mem>>
    tpu.enqueue_dma source(%11 : memref<1x16xf32, #tpu.memory_space<any>>) target(%12 : memref<1x16xf32, #tpu.memory_space<vmem>>) target_semaphore(%14 : memref<!tpu.dma_semaphore, #tpu.memory_space<semaphore_mem>>)
    %c3 = arith.constant 3 : index
    %15 = memref.load %arg0[%c3] : memref<8xi32, #tpu.memory_space<smem>>
    %c3_i32 = arith.constant 3 : i32
    %c0_i32_9 = arith.constant 0 : i32
    %16 = tpu.memref_slice %arg2[%15, %c0_i32_9] : memref<16x16xf32, #tpu.memory_space<any>> -> memref<1x16xf32, #tpu.memory_space<any>>
    %c3_i32_10 = arith.constant 3 : i32
    %c0_i32_11 = arith.constant 0 : i32
    %17 = tpu.memref_slice %arg8[%c3_i32_10, %c0_i32_11] : memref<8x16xf32, #tpu.memory_space<vmem>> -> memref<1x16xf32, #tpu.memory_space<vmem>>
    %18 = tpu.memref_slice %arg9[%c3_i32] : memref<8x!tpu.dma_semaphore, #tpu.memory_space<semaphore_mem>> -> memref<1x!tpu.dma_semaphore, #tpu.memory_space<semaphore_mem>>
    %19 = tpu.memref_squeeze %18 : memref<1x!tpu.dma_semaphore, #tpu.memory_space<semaphore_mem>> -> memref<!tpu.dma_semaphore, #tpu.memory_space<semaphore_mem>>
    tpu.enqueue_dma source(%16 : memref<1x16xf32, #tpu.memory_space<any>>) target(%17 : memref<1x16xf32, #tpu.memory_space<vmem>>) target_semaphore(%19 : memref<!tpu.dma_semaphore, #tpu.memory_space<semaphore_mem>>)
    %c4 = arith.constant 4 : index
    %20 = memref.load %arg0[%c4] : memref<8xi32, #tpu.memory_space<smem>>
    %c4_i32 = arith.constant 4 : i32
    %c0_i32_12 = arith.constant 0 : i32
    %21 = tpu.memref_slice %arg2[%20, %c0_i32_12] : memref<16x16xf32, #tpu.memory_space<any>> -> memref<1x16xf32, #tpu.memory_space<any>>
    %c4_i32_13 = arith.constant 4 : i32
    %c0_i32_14 = arith.constant 0 : i32
    %22 = tpu.memref_slice %arg8[%c4_i32_13, %c0_i32_14] : memref<8x16xf32, #tpu.memory_space<vmem>> -> memref<1x16xf32, #tpu.memory_space<vmem>>
    %23 = tpu.memref_slice %arg9[%c4_i32] : memref<8x!tpu.dma_semaphore, #tpu.memory_space<semaphore_mem>> -> memref<1x!tpu.dma_semaphore, #tpu.memory_space<semaphore_mem>>
    %24 = tpu.memref_squeeze %23 : memref<1x!tpu.dma_semaphore, #tpu.memory_space<semaphore_mem>> -> memref<!tpu.dma_semaphore, #tpu.memory_space<semaphore_mem>>
    tpu.enqueue_dma source(%21 : memref<1x16xf32, #tpu.memory_space<any>>) target(%22 : memref<1x16xf32, #tpu.memory_space<vmem>>) target_semaphore(%24 : memref<!tpu.dma_semaphore, #tpu.memory_space<semaphore_mem>>)
    %c5 = arith.constant 5 : index
    %25 = memref.load %arg0[%c5] : memref<8xi32, #tpu.memory_space<smem>>
    %c5_i32 = arith.constant 5 : i32
    %c0_i32_15 = arith.constant 0 : i32
    %26 = tpu.memref_slice %arg2[%25, %c0_i32_15] : memref<16x16xf32, #tpu.memory_space<any>> -> memref<1x16xf32, #tpu.memory_space<any>>
    %c5_i32_16 = arith.constant 5 : i32
    %c0_i32_17 = arith.constant 0 : i32
    %27 = tpu.memref_slice %arg8[%c5_i32_16, %c0_i32_17] : memref<8x16xf32, #tpu.memory_space<vmem>> -> memref<1x16xf32, #tpu.memory_space<vmem>>
    %28 = tpu.memref_slice %arg9[%c5_i32] : memref<8x!tpu.dma_semaphore, #tpu.memory_space<semaphore_mem>> -> memref<1x!tpu.dma_semaphore, #tpu.memory_space<semaphore_mem>>
    %29 = tpu.memref_squeeze %28 : memref<1x!tpu.dma_semaphore, #tpu.memory_space<semaphore_mem>> -> memref<!tpu.dma_semaphore, #tpu.memory_space<semaphore_mem>>
    tpu.enqueue_dma source(%26 : memref<1x16xf32, #tpu.memory_space<any>>) target(%27 : memref<1x16xf32, #tpu.memory_space<vmem>>) target_semaphore(%29 : memref<!tpu.dma_semaphore, #tpu.memory_space<semaphore_mem>>)
    %c6 = arith.constant 6 : index
    %30 = memref.load %arg0[%c6] : memref<8xi32, #tpu.memory_space<smem>>
    %c6_i32 = arith.constant 6 : i32
    %c0_i32_18 = arith.constant 0 : i32
    %31 = tpu.memref_slice %arg2[%30, %c0_i32_18] : memref<16x16xf32, #tpu.memory_space<any>> -> memref<1x16xf32, #tpu.memory_space<any>>
    %c6_i32_19 = arith.constant 6 : i32
    %c0_i32_20 = arith.constant 0 : i32
    %32 = tpu.memref_slice %arg8[%c6_i32_19, %c0_i32_20] : memref<8x16xf32, #tpu.memory_space<vmem>> -> memref<1x16xf32, #tpu.memory_space<vmem>>
    %33 = tpu.memref_slice %arg9[%c6_i32] : memref<8x!tpu.dma_semaphore, #tpu.memory_space<semaphore_mem>> -> memref<1x!tpu.dma_semaphore, #tpu.memory_space<semaphore_mem>>
    %34 = tpu.memref_squeeze %33 : memref<1x!tpu.dma_semaphore, #tpu.memory_space<semaphore_mem>> -> memref<!tpu.dma_semaphore, #tpu.memory_space<semaphore_mem>>
    tpu.enqueue_dma source(%31 : memref<1x16xf32, #tpu.memory_space<any>>) target(%32 : memref<1x16xf32, #tpu.memory_space<vmem>>) target_semaphore(%34 : memref<!tpu.dma_semaphore, #tpu.memory_space<semaphore_mem>>)
    %c7 = arith.constant 7 : index
    %35 = memref.load %arg0[%c7] : memref<8xi32, #tpu.memory_space<smem>>
    %c7_i32 = arith.constant 7 : i32
    %c0_i32_21 = arith.constant 0 : i32
    %36 = tpu.memref_slice %arg2[%35, %c0_i32_21] : memref<16x16xf32, #tpu.memory_space<any>> -> memref<1x16xf32, #tpu.memory_space<any>>
    %c7_i32_22 = arith.constant 7 : i32
    %c0_i32_23 = arith.constant 0 : i32
    %37 = tpu.memref_slice %arg8[%c7_i32_22, %c0_i32_23] : memref<8x16xf32, #tpu.memory_space<vmem>> -> memref<1x16xf32, #tpu.memory_space<vmem>>
    %38 = tpu.memref_slice %arg9[%c7_i32] : memref<8x!tpu.dma_semaphore, #tpu.memory_space<semaphore_mem>> -> memref<1x!tpu.dma_semaphore, #tpu.memory_space<semaphore_mem>>
    %39 = tpu.memref_squeeze %38 : memref<1x!tpu.dma_semaphore, #tpu.memory_space<semaphore_mem>> -> memref<!tpu.dma_semaphore, #tpu.memory_space<semaphore_mem>>
    tpu.enqueue_dma source(%36 : memref<1x16xf32, #tpu.memory_space<any>>) target(%37 : memref<1x16xf32, #tpu.memory_space<vmem>>) target_semaphore(%39 : memref<!tpu.dma_semaphore, #tpu.memory_space<semaphore_mem>>)
    %40 = tpu.iota {dimensions = array<i32: 1>} : vector<8x16xi32>
    %c0_24 = arith.constant 0 : index
    %c0_25 = arith.constant 0 : index
    %41 = vector.load %arg1[%c0_24, %c0_25] : memref<8x1xi32, #tpu.memory_space<vmem>>, vector<8x1xi32>
    %42 = vector.broadcast %41 : vector<8x1xi32> to vector<8x16xi32>
    %43 = arith.cmpi eq, %42, %40 : vector<8x16xi32>
    %44 = arith.extui %43 : vector<8x16xi1> to vector<8x16xi32>
    %45 = arith.sitofp %44 : vector<8x16xi32> to vector<8x16xf32>
    %46 = arith.truncf %45 : vector<8x16xf32> to vector<8x16xbf16>
    %c0_i32_26 = arith.constant 0 : i32
    %c0_i32_27 = arith.constant 0 : i32
    %47 = tpu.memref_slice %arg2[%0, %c0_i32_27] : memref<16x16xf32, #tpu.memory_space<any>> -> memref<1x16xf32, #tpu.memory_space<any>>
    %c0_i32_28 = arith.constant 0 : i32
    %c0_i32_29 = arith.constant 0 : i32
    %48 = tpu.memref_slice %arg8[%c0_i32_28, %c0_i32_29] : memref<8x16xf32, #tpu.memory_space<vmem>> -> memref<1x16xf32, #tpu.memory_space<vmem>>
    %49 = tpu.memref_slice %arg9[%c0_i32_26] : memref<8x!tpu.dma_semaphore, #tpu.memory_space<semaphore_mem>> -> memref<1x!tpu.dma_semaphore, #tpu.memory_space<semaphore_mem>>
    %50 = tpu.memref_squeeze %49 : memref<1x!tpu.dma_semaphore, #tpu.memory_space<semaphore_mem>> -> memref<!tpu.dma_semaphore, #tpu.memory_space<semaphore_mem>>
    tpu.wait_dma2 semaphore(%50 : memref<!tpu.dma_semaphore, #tpu.memory_space<semaphore_mem>>) src(%47 : memref<1x16xf32, #tpu.memory_space<any>>) dst(%48 : memref<1x16xf32, #tpu.memory_space<vmem>>)
    %c1_i32_30 = arith.constant 1 : i32
    %c0_i32_31 = arith.constant 0 : i32
    %51 = tpu.memref_slice %arg2[%5, %c0_i32_31] : memref<16x16xf32, #tpu.memory_space<any>> -> memref<1x16xf32, #tpu.memory_space<any>>
    %c1_i32_32 = arith.constant 1 : i32
    %c0_i32_33 = arith.constant 0 : i32
    %52 = tpu.memref_slice %arg8[%c1_i32_32, %c0_i32_33] : memref<8x16xf32, #tpu.memory_space<vmem>> -> memref<1x16xf32, #tpu.memory_space<vmem>>
    %53 = tpu.memref_slice %arg9[%c1_i32_30] : memref<8x!tpu.dma_semaphore, #tpu.memory_space<semaphore_mem>> -> memref<1x!tpu.dma_semaphore, #tpu.memory_space<semaphore_mem>>
    %54 = tpu.memref_squeeze %53 : memref<1x!tpu.dma_semaphore, #tpu.memory_space<semaphore_mem>> -> memref<!tpu.dma_semaphore, #tpu.memory_space<semaphore_mem>>
    tpu.wait_dma2 semaphore(%54 : memref<!tpu.dma_semaphore, #tpu.memory_space<semaphore_mem>>) src(%51 : memref<1x16xf32, #tpu.memory_space<any>>) dst(%52 : memref<1x16xf32, #tpu.memory_space<vmem>>)
    %c2_i32_34 = arith.constant 2 : i32
    %c0_i32_35 = arith.constant 0 : i32
    %55 = tpu.memref_slice %arg2[%10, %c0_i32_35] : memref<16x16xf32, #tpu.memory_space<any>> -> memref<1x16xf32, #tpu.memory_space<any>>
    %c2_i32_36 = arith.constant 2 : i32
    %c0_i32_37 = arith.constant 0 : i32
    %56 = tpu.memref_slice %arg8[%c2_i32_36, %c0_i32_37] : memref<8x16xf32, #tpu.memory_space<vmem>> -> memref<1x16xf32, #tpu.memory_space<vmem>>
    %57 = tpu.memref_slice %arg9[%c2_i32_34] : memref<8x!tpu.dma_semaphore, #tpu.memory_space<semaphore_mem>> -> memref<1x!tpu.dma_semaphore, #tpu.memory_space<semaphore_mem>>
    %58 = tpu.memref_squeeze %57 : memref<1x!tpu.dma_semaphore, #tpu.memory_space<semaphore_mem>> -> memref<!tpu.dma_semaphore, #tpu.memory_space<semaphore_mem>>
    tpu.wait_dma2 semaphore(%58 : memref<!tpu.dma_semaphore, #tpu.memory_space<semaphore_mem>>) src(%55 : memref<1x16xf32, #tpu.memory_space<any>>) dst(%56 : memref<1x16xf32, #tpu.memory_space<vmem>>)
    %c3_i32_38 = arith.constant 3 : i32
    %c0_i32_39 = arith.constant 0 : i32
    %59 = tpu.memref_slice %arg2[%15, %c0_i32_39] : memref<16x16xf32, #tpu.memory_space<any>> -> memref<1x16xf32, #tpu.memory_space<any>>
    %c3_i32_40 = arith.constant 3 : i32
    %c0_i32_41 = arith.constant 0 : i32
    %60 = tpu.memref_slice %arg8[%c3_i32_40, %c0_i32_41] : memref<8x16xf32, #tpu.memory_space<vmem>> -> memref<1x16xf32, #tpu.memory_space<vmem>>
    %61 = tpu.memref_slice %arg9[%c3_i32_38] : memref<8x!tpu.dma_semaphore, #tpu.memory_space<semaphore_mem>> -> memref<1x!tpu.dma_semaphore, #tpu.memory_space<semaphore_mem>>
    %62 = tpu.memref_squeeze %61 : memref<1x!tpu.dma_semaphore, #tpu.memory_space<semaphore_mem>> -> memref<!tpu.dma_semaphore, #tpu.memory_space<semaphore_mem>>
    tpu.wait_dma2 semaphore(%62 : memref<!tpu.dma_semaphore, #tpu.memory_space<semaphore_mem>>) src(%59 : memref<1x16xf32, #tpu.memory_space<any>>) dst(%60 : memref<1x16xf32, #tpu.memory_space<vmem>>)
    %c4_i32_42 = arith.constant 4 : i32
    %c0_i32_43 = arith.constant 0 : i32
    %63 = tpu.memref_slice %arg2[%20, %c0_i32_43] : memref<16x16xf32, #tpu.memory_space<any>> -> memref<1x16xf32, #tpu.memory_space<any>>
    %c4_i32_44 = arith.constant 4 : i32
    %c0_i32_45 = arith.constant 0 : i32
    %64 = tpu.memref_slice %arg8[%c4_i32_44, %c0_i32_45] : memref<8x16xf32, #tpu.memory_space<vmem>> -> memref<1x16xf32, #tpu.memory_space<vmem>>
    %65 = tpu.memref_slice %arg9[%c4_i32_42] : memref<8x!tpu.dma_semaphore, #tpu.memory_space<semaphore_mem>> -> memref<1x!tpu.dma_semaphore, #tpu.memory_space<semaphore_mem>>
    %66 = tpu.memref_squeeze %65 : memref<1x!tpu.dma_semaphore, #tpu.memory_space<semaphore_mem>> -> memref<!tpu.dma_semaphore, #tpu.memory_space<semaphore_mem>>
    tpu.wait_dma2 semaphore(%66 : memref<!tpu.dma_semaphore, #tpu.memory_space<semaphore_mem>>) src(%63 : memref<1x16xf32, #tpu.memory_space<any>>) dst(%64 : memref<1x16xf32, #tpu.memory_space<vmem>>)
    %c5_i32_46 = arith.constant 5 : i32
    %c0_i32_47 = arith.constant 0 : i32
    %67 = tpu.memref_slice %arg2[%25, %c0_i32_47] : memref<16x16xf32, #tpu.memory_space<any>> -> memref<1x16xf32, #tpu.memory_space<any>>
    %c5_i32_48 = arith.constant 5 : i32
    %c0_i32_49 = arith.constant 0 : i32
    %68 = tpu.memref_slice %arg8[%c5_i32_48, %c0_i32_49] : memref<8x16xf32, #tpu.memory_space<vmem>> -> memref<1x16xf32, #tpu.memory_space<vmem>>
    %69 = tpu.memref_slice %arg9[%c5_i32_46] : memref<8x!tpu.dma_semaphore, #tpu.memory_space<semaphore_mem>> -> memref<1x!tpu.dma_semaphore, #tpu.memory_space<semaphore_mem>>
    %70 = tpu.memref_squeeze %69 : memref<1x!tpu.dma_semaphore, #tpu.memory_space<semaphore_mem>> -> memref<!tpu.dma_semaphore, #tpu.memory_space<semaphore_mem>>
    tpu.wait_dma2 semaphore(%70 : memref<!tpu.dma_semaphore, #tpu.memory_space<semaphore_mem>>) src(%67 : memref<1x16xf32, #tpu.memory_space<any>>) dst(%68 : memref<1x16xf32, #tpu.memory_space<vmem>>)
    %c6_i32_50 = arith.constant 6 : i32
    %c0_i32_51 = arith.constant 0 : i32
    %71 = tpu.memref_slice %arg2[%30, %c0_i32_51] : memref<16x16xf32, #tpu.memory_space<any>> -> memref<1x16xf32, #tpu.memory_space<any>>
    %c6_i32_52 = arith.constant 6 : i32
    %c0_i32_53 = arith.constant 0 : i32
    %72 = tpu.memref_slice %arg8[%c6_i32_52, %c0_i32_53] : memref<8x16xf32, #tpu.memory_space<vmem>> -> memref<1x16xf32, #tpu.memory_space<vmem>>
    %73 = tpu.memref_slice %arg9[%c6_i32_50] : memref<8x!tpu.dma_semaphore, #tpu.memory_space<semaphore_mem>> -> memref<1x!tpu.dma_semaphore, #tpu.memory_space<semaphore_mem>>
    %74 = tpu.memref_squeeze %73 : memref<1x!tpu.dma_semaphore, #tpu.memory_space<semaphore_mem>> -> memref<!tpu.dma_semaphore, #tpu.memory_space<semaphore_mem>>
    tpu.wait_dma2 semaphore(%74 : memref<!tpu.dma_semaphore, #tpu.memory_space<semaphore_mem>>) src(%71 : memref<1x16xf32, #tpu.memory_space<any>>) dst(%72 : memref<1x16xf32, #tpu.memory_space<vmem>>)
    %c7_i32_54 = arith.constant 7 : i32
    %c0_i32_55 = arith.constant 0 : i32
    %75 = tpu.memref_slice %arg2[%35, %c0_i32_55] : memref<16x16xf32, #tpu.memory_space<any>> -> memref<1x16xf32, #tpu.memory_space<any>>
    %c7_i32_56 = arith.constant 7 : i32
    %c0_i32_57 = arith.constant 0 : i32
    %76 = tpu.memref_slice %arg8[%c7_i32_56, %c0_i32_57] : memref<8x16xf32, #tpu.memory_space<vmem>> -> memref<1x16xf32, #tpu.memory_space<vmem>>
    %77 = tpu.memref_slice %arg9[%c7_i32_54] : memref<8x!tpu.dma_semaphore, #tpu.memory_space<semaphore_mem>> -> memref<1x!tpu.dma_semaphore, #tpu.memory_space<semaphore_mem>>
    %78 = tpu.memref_squeeze %77 : memref<1x!tpu.dma_semaphore, #tpu.memory_space<semaphore_mem>> -> memref<!tpu.dma_semaphore, #tpu.memory_space<semaphore_mem>>
    tpu.wait_dma2 semaphore(%78 : memref<!tpu.dma_semaphore, #tpu.memory_space<semaphore_mem>>) src(%75 : memref<1x16xf32, #tpu.memory_space<any>>) dst(%76 : memref<1x16xf32, #tpu.memory_space<vmem>>)
    %c0_58 = arith.constant 0 : index
    %c0_59 = arith.constant 0 : index
    %79 = vector.load %arg8[%c0_58, %c0_59] : memref<8x16xf32, #tpu.memory_space<vmem>>, vector<8x16xf32>
    %80 = arith.truncf %79 : vector<8x16xf32> to vector<8x16xbf16>
    %cst = arith.constant dense<0.000000e+00> : vector<8x8xf32>
    %81 = tpu.matmul %80, %46, %cst {dimension_numbers = #tpu.dot_dimension_numbers<[1], [1], [0], [0], [0, 0, 1, 0], [], []>} : vector<8x16xbf16>, vector<8x16xbf16>, vector<8x8xf32> -> vector<8x8xf32>
    %82 = arith.truncf %81 : vector<8x8xf32> to vector<8x8xbf16>
    %c0_60 = arith.constant 0 : index
    %c0_61 = arith.constant 0 : index
    %83 = vector.load %arg6[%c0_60, %c0_61] : memref<8x128xf32, #tpu.memory_space<vmem>>, vector<8x128xf32>
    %c0_62 = arith.constant 0 : index
    %c0_63 = arith.constant 0 : index
    %84 = vector.load %arg3[%c0_62, %c0_63] : memref<8x128xbf16, #tpu.memory_space<vmem>>, vector<8x128xbf16>
    %85 = vector.extract_strided_slice %83 {offsets = [0, 0], sizes = [1, 128], strides = [1, 1]} : vector<8x128xf32> to vector<1x128xf32>
    %86 = vector.extract_strided_slice %83 {offsets = [1, 0], sizes = [1, 128], strides = [1, 1]} : vector<8x128xf32> to vector<1x128xf32>
    %87 = vector.extract_strided_slice %83 {offsets = [2, 0], sizes = [1, 128], strides = [1, 1]} : vector<8x128xf32> to vector<1x128xf32>
    %cst_64 = arith.constant dense<0.000000e+00> : vector<8x128xf32>
    %88 = tpu.matmul %82, %84, %cst_64 {dimension_numbers = #tpu.dot_dimension_numbers<[1], [0], [0], [1], [0, 0, 1, 1], [], []>} : vector<8x8xbf16>, vector<8x128xbf16>, vector<8x128xf32> -> vector<8x128xf32>
    %89 = arith.truncf %88 : vector<8x128xf32> to vector<8x128xbf16>
    %c0_65 = arith.constant 0 : index
    %c0_66 = arith.constant 0 : index
    %90 = vector.load %arg4[%c0_65, %c0_66] : memref<128x128xbf16, #tpu.memory_space<vmem>>, vector<128x128xbf16>
    %cst_67 = arith.constant dense<0.000000e+00> : vector<8x128xf32>
    %91 = tpu.matmul %89, %90, %cst_67 {dimension_numbers = #tpu.dot_dimension_numbers<[1], [0], [0], [1], [0, 0, 1, 1], [], []>} : vector<8x128xbf16>, vector<128x128xbf16>, vector<8x128xf32> -> vector<8x128xf32>
    %92 = vector.broadcast %85 : vector<1x128xf32> to vector<8x128xf32>
    %93 = arith.addf %91, %92 : vector<8x128xf32>
    %cst_68 = arith.constant 0.000000e+00 : f32
    %94 = vector.broadcast %cst_68 : f32 to vector<8x128xf32>
    %95 = arith.maximumf %93, %94 : vector<8x128xf32>
    %cst_69 = arith.constant dense<0.000000e+00> : vector<128xf32>
    %96 = vector.multi_reduction <add>, %95, %cst_69 [0] : vector<8x128xf32> to vector<128xf32>
    %97 = vector.shape_cast %96 : vector<128xf32> to vector<1x128xf32>
    %cst_70 = arith.constant 1.250000e-01 : f32
    %98 = vector.broadcast %cst_70 : f32 to vector<1x128xf32>
    %99 = arith.mulf %97, %98 : vector<1x128xf32>
    %100 = vector.broadcast %99 : vector<1x128xf32> to vector<8x128xf32>
    %101 = arith.subf %95, %100 : vector<8x128xf32>
    %102 = arith.mulf %101, %101 : vector<8x128xf32>
    %cst_71 = arith.constant dense<0.000000e+00> : vector<128xf32>
    %103 = vector.multi_reduction <add>, %102, %cst_71 [0] : vector<8x128xf32> to vector<128xf32>
    %104 = vector.shape_cast %103 : vector<128xf32> to vector<1x128xf32>
    %cst_72 = arith.constant 1.250000e-01 : f32
    %105 = vector.broadcast %cst_72 : f32 to vector<1x128xf32>
    %106 = arith.mulf %104, %105 : vector<1x128xf32>
    %cst_73 = arith.constant 9.99999974E-6 : f32
    %107 = vector.broadcast %cst_73 : f32 to vector<1x128xf32>
    %108 = arith.addf %106, %107 : vector<1x128xf32>
    %109 = math.rsqrt %108 : vector<1x128xf32>
    %110 = vector.broadcast %109 : vector<1x128xf32> to vector<8x128xf32>
    %111 = arith.mulf %101, %110 : vector<8x128xf32>
    %112 = vector.broadcast %86 : vector<1x128xf32> to vector<8x128xf32>
    %113 = arith.mulf %111, %112 : vector<8x128xf32>
    %114 = vector.broadcast %87 : vector<1x128xf32> to vector<8x128xf32>
    %115 = arith.addf %113, %114 : vector<8x128xf32>
    %116 = arith.truncf %115 : vector<8x128xf32> to vector<8x128xbf16>
    %117 = vector.extract_strided_slice %83 {offsets = [3, 0], sizes = [1, 128], strides = [1, 1]} : vector<8x128xf32> to vector<1x128xf32>
    %118 = vector.extract_strided_slice %83 {offsets = [4, 0], sizes = [1, 128], strides = [1, 1]} : vector<8x128xf32> to vector<1x128xf32>
    %119 = vector.extract_strided_slice %83 {offsets = [5, 0], sizes = [1, 128], strides = [1, 1]} : vector<8x128xf32> to vector<1x128xf32>
    %cst_74 = arith.constant dense<0.000000e+00> : vector<8x128xf32>
    %120 = tpu.matmul %82, %116, %cst_74 {dimension_numbers = #tpu.dot_dimension_numbers<[1], [0], [0], [1], [0, 0, 1, 1], [], []>} : vector<8x8xbf16>, vector<8x128xbf16>, vector<8x128xf32> -> vector<8x128xf32>
    %121 = arith.truncf %120 : vector<8x128xf32> to vector<8x128xbf16>
    %c0_75 = arith.constant 0 : index
    %c0_76 = arith.constant 0 : index
    %122 = vector.load %arg5[%c0_75, %c0_76] : memref<128x128xbf16, #tpu.memory_space<vmem>>, vector<128x128xbf16>
    %cst_77 = arith.constant dense<0.000000e+00> : vector<8x128xf32>
    %123 = tpu.matmul %121, %122, %cst_77 {dimension_numbers = #tpu.dot_dimension_numbers<[1], [0], [0], [1], [0, 0, 1, 1], [], []>} : vector<8x128xbf16>, vector<128x128xbf16>, vector<8x128xf32> -> vector<8x128xf32>
    %124 = vector.broadcast %117 : vector<1x128xf32> to vector<8x128xf32>
    %125 = arith.addf %123, %124 : vector<8x128xf32>
    %cst_78 = arith.constant 0.000000e+00 : f32
    %126 = vector.broadcast %cst_78 : f32 to vector<8x128xf32>
    %127 = arith.maximumf %125, %126 : vector<8x128xf32>
    %cst_79 = arith.constant dense<0.000000e+00> : vector<128xf32>
    %128 = vector.multi_reduction <add>, %127, %cst_79 [0] : vector<8x128xf32> to vector<128xf32>
    %129 = vector.shape_cast %128 : vector<128xf32> to vector<1x128xf32>
    %cst_80 = arith.constant 1.250000e-01 : f32
    %130 = vector.broadcast %cst_80 : f32 to vector<1x128xf32>
    %131 = arith.mulf %129, %130 : vector<1x128xf32>
    %132 = vector.broadcast %131 : vector<1x128xf32> to vector<8x128xf32>
    %133 = arith.subf %127, %132 : vector<8x128xf32>
    %134 = arith.mulf %133, %133 : vector<8x128xf32>
    %cst_81 = arith.constant dense<0.000000e+00> : vector<128xf32>
    %135 = vector.multi_reduction <add>, %134, %cst_81 [0] : vector<8x128xf32> to vector<128xf32>
    %136 = vector.shape_cast %135 : vector<128xf32> to vector<1x128xf32>
    %cst_82 = arith.constant 1.250000e-01 : f32
    %137 = vector.broadcast %cst_82 : f32 to vector<1x128xf32>
    %138 = arith.mulf %136, %137 : vector<1x128xf32>
    %cst_83 = arith.constant 9.99999974E-6 : f32
    %139 = vector.broadcast %cst_83 : f32 to vector<1x128xf32>
    %140 = arith.addf %138, %139 : vector<1x128xf32>
    %141 = math.rsqrt %140 : vector<1x128xf32>
    %142 = vector.broadcast %141 : vector<1x128xf32> to vector<8x128xf32>
    %143 = arith.mulf %133, %142 : vector<8x128xf32>
    %144 = vector.broadcast %118 : vector<1x128xf32> to vector<8x128xf32>
    %145 = arith.mulf %143, %144 : vector<8x128xf32>
    %146 = vector.broadcast %119 : vector<1x128xf32> to vector<8x128xf32>
    %147 = arith.addf %145, %146 : vector<8x128xf32>
    %c0_84 = arith.constant 0 : index
    %c0_85 = arith.constant 0 : index
    %148 = vector.load %arg7[%c0_84, %c0_85] : memref<8x128xf32, #tpu.memory_space<vmem>>, vector<8x128xf32>
    tpu.vector_store %arg7[%c0_84, %c0_85], %147 {strides = array<i32>} : memref<8x128xf32, #tpu.memory_space<vmem>>, vector<8x128xf32>,
    return
  }
}

</mosaic_0001>

<bundles_post_ra>
// kernel: tpu_custom_call.1
= control target key start
LH: loop header
LB: loop body
LE: loop exit
PB: predicated region body
PF: predicated region fallthrough
CT: control target
= control target key end

     0   :  { %12 = vsyncpa [#allocation7], 0  ;;  %s1200_s0 = inlined_call_operand.vmem [shape: s32[8], index: 0, kind: input, shape index: {}]   ;;  %s1201_s1 = inlined_call_operand.vmem [shape: s32[8,1], index: 1, kind: input, shape index: {}]   ;;  %s1202_s2 = inlined_call_operand.hbm [shape: f32[16,16], index: 2, kind: input, shape index: {}]   ;;  %s1203_s3 = inlined_call_operand.vmem [shape: bf16[8,128], index: 3, kind: input, shape index: {}]   ;;  %s1204_s4 = inlined_call_operand.hbm [shape: bf16[128,128], index: 4, kind: input, shape index: {}]   ;;  %s1205_s5 = inlined_call_operand.hbm [shape: bf16[128,128], index: 5, kind: input, shape index: {}]   ;;  %s1206_s6 = inlined_call_operand.vmem [shape: f32[8,128], index: 6, kind: input, shape index: {}]   ;;  %s1207_s7 = inlined_call_operand.hbm [shape: f32[8,128], index: 7, kind: output, shape index: {}]  }
   0x1   :  { %13 = vsyncpa [#allocation5], 0 }
   0x2   :  { %14 = vsyncpa [#allocation10], 0 }
   0x3   :  { %15 = vsyncpa [#allocation6], 0  ;;  %s21_s26 = sshll.u32 %s1200_s0, 4  ;;  %s33_s29 = sshll.u32 %s1204_s4, 4  ;;  %s22_s26 = int_to_ptr.vmem [resolvable:$true] %s21_s26  ;;  %s34_s29 = int_to_ptr.hbm [resolvable:$true] %s33_s29 }
   0x4   :  { %s1022_s30 = smov [#allocation4]   ;;  %s1023_s8 = smov [#allocation8]  }
   0x5   :  { %24 = dma.vmem_to_smem %s22_s26, 16, %s1022_s30, [#allocation7]  }
   0x6   :  { %s35_s9 = sshll.u32 %s1023_s8, 4  ;;  %s1024_s10 = smov 64   ;;  %s36_s9 = int_to_ptr.vmem [resolvable:$true] %s35_s9 }
   0x7   :  { %s1025_s11 = smov 4   ;;  %s46_s14 = sshll.u32 %s1205_s5, 4  ;;  %s47_s14 = int_to_ptr.hbm [resolvable:$true] %s46_s14 }
   0x8   :  { %41 = dma.hbm_to_vmem [thread:$0]  %s34_s29, 1024, %s36_s9, [#allocation5], %s1024_s10, %s1024_s10, %s1025_s11  }
   0x9   :  { %s1026_s0 = smov [#allocation9]  }
   0xa   :  { %s48_s15 = sshll.u32 %s1026_s0, 4  ;;  %s49_s15 = int_to_ptr.vmem [resolvable:$true] %s48_s15 }
   0xb   :  { %54 = dma.hbm_to_vmem [thread:$0]  %s47_s14, 1024, %s49_s15, [#allocation10], %s1024_s10, %s1024_s10, %s1025_s11  }
   0xc   :  { %998 = dma.done.wait [#allocation7], 16  }
   0xd   :  { %999 = vsyncadd [#allocation7], 4294967280 }
   0xe   :  { %1000 = dma.done.wait [#allocation5], 1024  }
   0xf   :  { %1001 = vsyncadd [#allocation5], 4294966272 }
  0x10   :  { %1002 = dma.done.wait [#allocation10], 1024  }
  0x11   :  { %1003 = vsyncadd [#allocation10], 4294966272 }
  0x12   :  { %69 = sfence }
  0x13   :  { %v207_v0 = vld [vmem:[%s1201_s1] sm:$0xff]  ;;  %s71_s17 = sld [smem:[#allocation4]]  ;;  %v1027_v1 = vmov 0   ;;  %s1028_s5 = smov [#allocation2]  }
  0x14   :  { %717 = vset.pattern.permute.xlu0 %v1027_v1  ;;  %s82_s18 = sshll.u32 %s1028_s5, 4  ;;  %s602_s19 = sld [smem:[#allocation4 + $0x1]]  ;;  %s83_s18 = int_to_ptr.vmem [resolvable:$true] %s82_s18 }
  0x15   :  { %209 = vperm.xlu0 %717, %v207_v0   ;;  %s1029_s20 = smov [#allocation2 + $0x1]   ;;  %s1092_s22 = sld [smem:[#allocation4 + $0x2]] }
  0x16   :  { %s1090_s21 = sshll.u32 %s1029_s20, 4  ;;  %s1030_s23 = smov [#allocation2 + $0x2]   ;;  %s100_s21 = int_to_ptr.vmem [resolvable:$true] %s1090_s21 }
  0x17   :  { %s1095_s24 = sshll.u32 %s1030_s23, 4  ;;  %s1097_s1 = sld [smem:[#allocation4 + $0x3]]  ;;  %s117_s24 = int_to_ptr.vmem [resolvable:$true] %s1095_s24 }
  0x18   :  { %s1109_s14 = scalar_lea.hbm %s1202_s2, 16 }
  0x19   :  { %s72_s27 = scalar_lea.hbm %s1202_s2, %s71_s17 }
  0x1a   :  { %s80_s28 = sshll.u32 %s72_s27, 4  ;;  %s87_s8 = scalar_lea.hbm %s1202_s2, %s602_s19  ;;  %s81_s28 = int_to_ptr.hbm [resolvable:$true] %s80_s28 }
  0x1b   :  { %s97_s9 = sshll.u32 %s87_s8, 4  ;;  %s782_s10 = sshra.s32 %s81_s28, 4  ;;  %s783_s10 = int_to_ptr.hbm [resolvable:$true] %s782_s10  ;;  %s98_s9 = int_to_ptr.hbm [resolvable:$true] %s97_s9 }
  0x1c   :  { %s784_s11 = scalar_lea.hbm %s783_s10, 1  ;;  %p787_p1 = scmp.lt.s32.totalorder %s783_s10, %s1202_s2 }
  0x1d   :  { %p785_p0 = scmp.ne.s32.totalorder %s783_s10, %s784_s11  ;;  %p788_p2 = scmp.lt.s32.totalorder %s1109_s14, %s784_s11 }
  0x1f   :  { %p789_p3 = por %p788_p2, %p787_p1 }
  0x21   :  { %p790_p4 = pnand %p789_p3, %p785_p0 }
  0x23   :  { %793 = shalt.err (!%p790_p4)  }
  0x24   :  { %85 = dma.hbm_to_vmem [thread:$0]  %s81_s28, 16, %s83_s18, [#allocation3] }
  0x25   :  { %s104_s17 = scalar_lea.hbm %s1202_s2, %s1092_s22  ;;  %s806_s5 = sshra.s32 %s98_s9, 4  ;;  %s807_s5 = int_to_ptr.hbm [resolvable:$true] %s806_s5 }
  0x26   :  { %s808_s19 = scalar_lea.hbm %s807_s5, 1  ;;  %p811_p6 = scmp.lt.s32.totalorder %s807_s5, %s1202_s2 }
  0x27   :  { %p809_p5 = scmp.ne.s32.totalorder %s807_s5, %s808_s19  ;;  %p812_p7 = scmp.lt.s32.totalorder %s1109_s14, %s808_s19 }
  0x29   :  { %p813_p8 = por %p812_p7, %p811_p6 }
  0x2b   :  { %p814_p9 = pnand %p813_p8, %p809_p5 }
  0x2d   :  { %817 = shalt.err (!%p814_p9)  }
  0x2e   :  { %102 = dma.hbm_to_vmem [thread:$0]  %s98_s9, 16, %s100_s21, [#allocation3 + $0x1] }
  0x2f   :  { %s114_s18 = sshll.u32 %s104_s17, 4  ;;  %s121_s26 = scalar_lea.hbm %s1202_s2, %s1097_s1  ;;  %s115_s18 = int_to_ptr.hbm [resolvable:$true] %s114_s18 }
  0x30   :  { %s131_s27 = sshll.u32 %s121_s26, 4  ;;  %s830_s28 = sshra.s32 %s115_s18, 4  ;;  %s831_s28 = int_to_ptr.hbm [resolvable:$true] %s830_s28  ;;  %s132_s27 = int_to_ptr.hbm [resolvable:$true] %s131_s27 }
  0x31   :  { %s832_s29 = scalar_lea.hbm %s831_s28, 1  ;;  %p835_p11 = scmp.lt.s32.totalorder %s831_s28, %s1202_s2 }
  0x32   :  { %p833_p10 = scmp.ne.s32.totalorder %s831_s28, %s832_s29  ;;  %p836_p12 = scmp.lt.s32.totalorder %s1109_s14, %s832_s29 }
  0x34   :  { %p837_p13 = por %p836_p12, %p835_p11 }
  0x36   :  { %p838_p0 = pnand %p837_p13, %p833_p10 }
  0x38   :  { %841 = shalt.err (!%p838_p0)  }
  0x39   :  { %119 = dma.hbm_to_vmem [thread:$0]  %s115_s18, 16, %s117_s24, [#allocation3 + $0x2] }
  0x3a   :  { %s1031_s21 = smov [#allocation2 + $0x3]   ;;  %s605_s9 = sld [smem:[#allocation4 + $0x4]] }
  0x3b   :  { %s133_s1 = sshll.u32 %s1031_s21, 4  ;;  %s854_s10 = sshra.s32 %s132_s27, 4  ;;  %s134_s1 = int_to_ptr.vmem [resolvable:$true] %s133_s1  ;;  %s855_s10 = int_to_ptr.hbm [resolvable:$true] %s854_s10 }
  0x3c   :  { %s856_s11 = scalar_lea.hbm %s855_s10, 1  ;;  %p859_p2 = scmp.lt.s32.totalorder %s855_s10, %s1202_s2 }
  0x3d   :  { %p857_p1 = scmp.ne.s32.totalorder %s855_s10, %s856_s11  ;;  %p860_p3 = scmp.lt.s32.totalorder %s1109_s14, %s856_s11 }
  0x3f   :  { %p861_p4 = por %p860_p3, %p859_p2 }
  0x41   :  { %p862_p5 = pnand %p861_p4, %p857_p1 }
  0x43   :  { %865 = shalt.err (!%p862_p5)  }
  0x44   :  { %136 = dma.hbm_to_vmem [thread:$0]  %s132_s27, 16, %s134_s1, [#allocation3 + $0x3] }
  0x45   :  { %s1032_s0 = smov [#allocation2 + $0x4]   ;;  %s606_s15 = sld [smem:[#allocation4 + $0x5]] }
  0x46   :  { %s150_s24 = sshll.u32 %s1032_s0, 4  ;;  %s1033_s4 = smov [#allocation2 + $0x5]   ;;  %s151_s24 = int_to_ptr.vmem [resolvable:$true] %s150_s24 }
  0x47   :  { %s1139_s16 = sshll.u32 %s1033_s4, 4  ;;  %s607_s17 = sld [smem:[#allocation4 + $0x6]]  ;;  %s168_s16 = int_to_ptr.vmem [resolvable:$true] %s1139_s16 }
  0x48   :  { %s138_s20 = scalar_lea.hbm %s1202_s2, %s605_s9  ;;  %s1034_s18 = smov [#allocation2 + $0x6]  }
  0x49   :  { %s148_s23 = sshll.u32 %s138_s20, 4  ;;  %s1145_s25 = sshll.u32 %s1034_s18, 4  ;;  %s149_s23 = int_to_ptr.hbm [resolvable:$true] %s148_s23  ;;  %s185_s25 = int_to_ptr.vmem [resolvable:$true] %s1145_s25 }
  0x4a   :  { %s878_s22 = sshra.s32 %s149_s23, 4  ;;  %s879_s22 = int_to_ptr.hbm [resolvable:$true] %s878_s22 }
  0x4b   :  { %s880_s26 = scalar_lea.hbm %s879_s22, 1  ;;  %p883_p7 = scmp.lt.s32.totalorder %s879_s22, %s1202_s2 }
  0x4c   :  { %p881_p6 = scmp.ne.s32.totalorder %s879_s22, %s880_s26  ;;  %p884_p8 = scmp.lt.s32.totalorder %s1109_s14, %s880_s26 }
  0x4e   :  { %p885_p9 = por %p884_p8, %p883_p7 }
  0x50   :  { %p886_p10 = pnand %p885_p9, %p881_p6 }
  0x52   :  { %889 = shalt.err (!%p886_p10)  }
  0x53   :  { %153 = dma.hbm_to_vmem [thread:$0]  %s149_s23, 16, %s151_s24, [#allocation3 + $0x4] }
  0x54   :  { %s155_s8 = scalar_lea.hbm %s1202_s2, %s606_s15  ;;  %s172_s10 = scalar_lea.hbm %s1202_s2, %s607_s17 }
  0x55   :  { %s165_s21 = sshll.u32 %s155_s8, 4  ;;  %s182_s11 = sshll.u32 %s172_s10, 4  ;;  %s166_s21 = int_to_ptr.hbm [resolvable:$true] %s165_s21  ;;  %s183_s11 = int_to_ptr.hbm [resolvable:$true] %s182_s11 }
  0x56   :  { %s902_s12 = sshra.s32 %s166_s21, 4  ;;  %s903_s12 = int_to_ptr.hbm [resolvable:$true] %s902_s12 }
  0x57   :  { %s904_s13 = scalar_lea.hbm %s903_s12, 1  ;;  %p907_p12 = scmp.lt.s32.totalorder %s903_s12, %s1202_s2 }
  0x58   :  { %p905_p11 = scmp.ne.s32.totalorder %s903_s12, %s904_s13  ;;  %p908_p13 = scmp.lt.s32.totalorder %s1109_s14, %s904_s13 }
  0x5a   :  { %p909_p0 = por %p908_p13, %p907_p12 }
  0x5c   :  { %p910_p1 = pnand %p909_p0, %p905_p11 }
  0x5e   :  { %913 = shalt.err (!%p910_p1)  }
  0x5f   :  { %170 = dma.hbm_to_vmem [thread:$0]  %s166_s21, 16, %s168_s16, [#allocation3 + $0x5] }
  0x60   :  { %s608_s15 = sld [smem:[#allocation4 + $0x7]]  ;;  %s926_s4 = sshra.s32 %s183_s11, 4  ;;  %s927_s4 = int_to_ptr.hbm [resolvable:$true] %s926_s4 }
  0x61   :  { %s928_s17 = scalar_lea.hbm %s927_s4, 1  ;;  %p931_p3 = scmp.lt.s32.totalorder %s927_s4, %s1202_s2 }
  0x62   :  { %p929_p2 = scmp.ne.s32.totalorder %s927_s4, %s928_s17  ;;  %p932_p4 = scmp.lt.s32.totalorder %s1109_s14, %s928_s17 }
  0x64   :  { %p933_p5 = por %p932_p4, %p931_p3 }
  0x66   :  { %p934_p6 = pnand %p933_p5, %p929_p2 }
  0x68   :  { %937 = shalt.err (!%p934_p6)  }
  0x69   :  { %187 = dma.hbm_to_vmem [thread:$0]  %s183_s11, 16, %s185_s25, [#allocation3 + $0x6] }
  0x6a   :  { %s1035_s20 = smov [#allocation2 + $0x7]   ;;  %s189_s22 = scalar_lea.hbm %s1202_s2, %s608_s15 }
  0x6b   :  { %s201_s23 = sshll.u32 %s1035_s20, 4  ;;  %s199_s26 = sshll.u32 %s189_s22, 4  ;;  %s202_s23 = int_to_ptr.vmem [resolvable:$true] %s201_s23  ;;  %s200_s26 = int_to_ptr.hbm [resolvable:$true] %s199_s26 }
  0x6c   :  { %s950_s27 = sshra.s32 %s200_s26, 4  ;;  %s951_s27 = int_to_ptr.hbm [resolvable:$true] %s950_s27 }
  0x6d   :  { %s952_s28 = scalar_lea.hbm %s951_s27, 1  ;;  %p955_p8 = scmp.lt.s32.totalorder %s951_s27, %s1202_s2 }
  0x6e   :  { %p953_p7 = scmp.ne.s32.totalorder %s951_s27, %s952_s28  ;;  %p956_p9 = scmp.lt.s32.totalorder %s1109_s14, %s952_s28 }
  0x70   :  { %p957_p10 = por %p956_p9, %p955_p8 }
  0x72   :  { %p958_p11 = pnand %p957_p10, %p953_p7 }
  0x74   :  { %961 = shalt.err (!%p958_p11)  }
  0x75   :  { %204 = dma.hbm_to_vmem [thread:$0]  %s200_s26, 16, %s202_s23, [#allocation3 + $0x7]  ;;  %v205_v2 = vlaneseq  ;;  %v1036_v5 = vmov 0.0  }
  0x77   :  { %v206_v3 = vand.u32 127, %v205_v2 }
  0x87   :  { %v210_v4 = vpop.permute.xlu0 %209 }
  0x88   :  { %vm211_vm0 = vcmp.eq.s32.totalorder %v210_v4, %v206_v3 }
  0x89   :  { %v609_v6 = vsel %vm211_vm0, 1.0, %v1036_v5 }
  0x8a   :  { %v214_v7 = vpack.c.bf16 %v609_v6, %v609_v6 }
  0x8b   :  { %1004 = dma.done.wait [#allocation3], 16 }
  0x8c   :  { %1005 = vsyncadd [#allocation3], 4294967280 }
  0x8d   :  { %1006 = dma.done.wait [#allocation3 + $0x1], 16 }
  0x8e   :  { %1007 = vsyncadd [#allocation3 + $0x1], 4294967280 }
  0x8f   :  { %1008 = dma.done.wait [#allocation3 + $0x2], 16 }
  0x90   :  { %1009 = vsyncadd [#allocation3 + $0x2], 4294967280 }
  0x91   :  { %1010 = dma.done.wait [#allocation3 + $0x3], 16 }
  0x92   :  { %1011 = vsyncadd [#allocation3 + $0x3], 4294967280 }
  0x93   :  { %1012 = dma.done.wait [#allocation3 + $0x4], 16 }
  0x94   :  { %1013 = vsyncadd [#allocation3 + $0x4], 4294967280 }
  0x95   :  { %1014 = dma.done.wait [#allocation3 + $0x5], 16 }
  0x96   :  { %1015 = vsyncadd [#allocation3 + $0x5], 4294967280 }
  0x97   :  { %1016 = dma.done.wait [#allocation3 + $0x6], 16 }
  0x98   :  { %1017 = vsyncadd [#allocation3 + $0x6], 4294967280 }
  0x99   :  { %1018 = dma.done.wait [#allocation3 + $0x7], 16 }
  0x9a   :  { %1019 = vsyncadd [#allocation3 + $0x7], 4294967280  ;;  %vm234_vm1 = vcmask 130048   ;;  %v232_v9 = vld [vmem:[#allocation2] sm:$0xff]  ;;  %vm261_vm2 = vcmask 1043456   ;;  %v691_v14 = vld [vmem:[#allocation8 + $0x30] sm:$0xff] }
  0x9b   :  { %v239_v8 = vsel %vm234_vm1, %v214_v7, 0  ;;  %v233_v10 = vpack.c.bf16 %v232_v9, %v232_v9  ;;  %v256_v11 = vld [vmem:[%s1203_s3] sm:$0xf]  ;;  %v690_v15 = vld [vmem:[#allocation8 + $0x28] sm:$0xff]  ;;  %v689_v16 = vld [vmem:[#allocation8 + $0x20] sm:$0xff]  ;;  %vm257_vm3 = vcmask 64512  }
  0x9c   :  { %248 = vmatpush.bf16.xpose.msra.mxu0 %v239_v8  ;;  %v263_v12 = vsel %vm261_vm2, %v256_v11, 0  ;;  %v692_v13 = vld [vmem:[#allocation8 + $0x38] sm:$0xff]  ;;  %v687_v18 = vld [vmem:[#allocation8 + $0x10] sm:$0xff]  ;;  %v686_v19 = vld [vmem:[#allocation8 + $0x8] sm:$0xff]  ;;  %s527_s9 = sshll.u32 %s1207_s7, 4  ;;  %s528_s9 = int_to_ptr.hbm [resolvable:$true] %s527_s9 }
  0x9d   :  { %272 = vmatpush.bf16.msra.mxu3 %v263_v12  ;;  %344 = vmatpush.bf16.msra.mxu2 %v692_v13  ;;  %v688_v17 = vld [vmem:[#allocation8 + $0x18] sm:$0xff]  ;;  %v685_v23 = vld [vmem:[#allocation8] sm:$0xff]  ;;  %v699_v51 = vld [vmem:[#allocation9 + $0x30] sm:$0xff] }
  0x9e   :  { %v1186_v27 = vld [vmem:[%s1206_s6] sm:$0xff]  ;;  %v698_v52 = vld [vmem:[#allocation9 + $0x28] sm:$0xff]  ;;  %v697_v55 = vld [vmem:[#allocation9 + $0x20] sm:$0xff]  ;;  %s1037_s6 = smov [#allocation11]  }
  0x9f   :  { %v295_v28 = vperm.slane %v1186_v27, 0  ;;  %v700_v50 = vld [vmem:[#allocation9 + $0x38] sm:$0xff]  ;;  %v386_v61 = vperm.slane %v1186_v27, 1  ;;  %v695_v62 = vld [vmem:[#allocation9 + $0x10] sm:$0xff]  ;;  %v388_v1 = vperm.slane %v1186_v27, 2  ;;  %v694_v3 = vld [vmem:[#allocation9 + $0x8] sm:$0xff] }
  0xa0   :  { %473 = vmatpush.bf16.msra.mxu1 %v700_v50  ;;  %v696_v58 = vld [vmem:[#allocation9 + $0x18] sm:$0xff]  ;;  %v693_v7 = vld [vmem:[#allocation9] sm:$0xff]  ;;  %v424_v11 = vperm.slane %v1186_v27, 3  ;;  %s525_s8 = sshll.u32 %s1037_s6, 4  ;;  %s526_s8 = int_to_ptr.vmem [resolvable:$true] %s525_s8 }
  0xa1   :  { %345 = vmatpush.bf16.msra.mxu2 %v691_v14 }
  0xa3   :  { %610 = vmatmul.msk.bf16.vlgmr.msra.gmra.mxu0 %vm234_vm1, %v233_v10 }
  0xa4   :  { %474 = vmatpush.bf16.msra.mxu1 %v699_v51 }
  0xa5   :  { %346 = vmatpush.bf16.msra.mxu2 %v690_v15 }
  0xa8   :  { %475 = vmatpush.bf16.msra.mxu1 %v698_v52 }
  0xa9   :  { %347 = vmatpush.bf16.msra.mxu2 %v689_v16 }
  0xac   :  { %476 = vmatpush.bf16.msra.mxu1 %v697_v55 }
  0xad   :  { %348 = vmatpush.bf16.msra.mxu2 %v688_v17 }
  0xb0   :  { %477 = vmatpush.bf16.msra.mxu1 %v696_v58 }
  0xb1   :  { %349 = vmatpush.bf16.msra.mxu2 %v687_v18 }
  0xb4   :  { %478 = vmatpush.bf16.msra.mxu1 %v695_v62 }
  0xb5   :  { %350 = vmatpush.bf16.msra.mxu2 %v686_v19 }
  0xb8   :  { %479 = vmatpush.bf16.msra.mxu1 %v694_v3 }
  0xb9   :  { %351 = vmatpush.bf16.msra.mxu2 %v685_v23 }
  0xbc   :  { %480 = vmatpush.bf16.msra.mxu1 %v693_v7 }
 0x120   :  { %v250_v20 = vpop.f32.mrf.mxu0 }
 0x121   :  { %v1179_v21 = vpack.c.bf16 %v250_v20, %v250_v20 }
 0x123   :  { %611 = vmatmul.msk.bf16.vlgmr.msra.gmra.mxu3 %vm257_vm3, %v1179_v21 }
 0x128   :  { %v252_v22 = vpop.f32.mrf.mxu0 }
 0x1a6   :  { %v274_v24 = vpop.f32.mrf.mxu3 }
 0x1a7   :  { %v278_v25 = vpack.c.bf16 %v274_v24, %v274_v24 }
 0x1a9   :  { %352 = vmatmul.bf16.vlgmr.msra.gmra.mxu2 %v278_v25 }
 0x1ae   :  { %v276_v26 = vpop.f32.mrf.mxu3 }
 0x22c   :  { %v353_v29 = vpop.f32.mrf.mxu2 }
 0x22d   :  { %v354_v30 = vadd.f32 %v353_v29, %v295_v28 }
 0x22f   :  { %v357_v31 = vmax.f32 %v354_v30, 0.0 }
 0x231   :  { %v358_v32 = vrot.slane %v357_v31, 4 }
 0x233   :  { %v359_v33 = vadd.f32 %v358_v32, %v357_v31 }
 0x234   :  { %v355_v34 = vpop.f32.mrf.mxu2 }
 0x235   :  { %v360_v35 = vrot.slane %v359_v33, 2 }
 0x237   :  { %v361_v36 = vadd.f32 %v360_v35, %v359_v33 }
 0x239   :  { %v362_v37 = vrot.slane %v361_v36, 1 }
 0x23b   :  { %v363_v38 = vadd.f32 %v362_v37, %v361_v36 }
 0x23d   :  { %v364_v39 = vmul.f32 0.125, %v363_v38 }
 0x23f   :  { %v365_v40 = vsub.f32 %v357_v31, %v364_v39 }
 0x241   :  { %v366_v41 = vmul.f32 %v365_v40, %v365_v40 }
 0x243   :  { %v367_v42 = vrot.slane %v366_v41, 4 }
 0x245   :  { %v368_v43 = vadd.f32 %v367_v42, %v366_v41 }
 0x247   :  { %v369_v44 = vrot.slane %v368_v43, 2 }
 0x249   :  { %v370_v45 = vadd.f32 %v369_v44, %v368_v43  ;;  %v517_v43 = vperm.slane %v1186_v27, 5 }
 0x24b   :  { %v371_v46 = vrot.slane %v370_v45, 1 }
 0x24d   :  { %v372_v47 = vadd.f32 %v371_v46, %v370_v45 }
 0x24f   :  { %v373_v48 = vmul.f32 0.125, %v372_v47 }
 0x251   :  { %v374_v49 = vadd.f32 1e-05, %v373_v48 }
 0x253   :  { %718 = vrsqrt.f32 %v374_v49  ;;  %vm381_vm5 = vweird.f32 %v374_v49 }
 0x259   :  { %v719_v53 = vpop.eup %718 }
 0x25a   :  { %v376_v54 = vmul.f32 %v719_v53, %v374_v49  ;;  %vm382_vm4 = vweird.f32 %v719_v53 }
 0x25b   :  { %vm383_vm6 = vmor %vm381_vm5, %vm382_vm4 }
 0x25c   :  { %v377_v56 = vmul.f32 %v719_v53, %v376_v54 }
 0x25e   :  { %v378_v57 = vmul.f32 0.5, %v377_v56 }
 0x260   :  { %v379_v59 = vsub.f32 1.5, %v378_v57 }
 0x262   :  { %v380_v60 = vmul.f32 %v719_v53, %v379_v59 }
 0x264   :  { %v384_v63 = vsel %vm383_vm6, %v719_v53, %v380_v60 }
 0x265   :  { %v385_v0 = vmul.f32 %v384_v63, %v365_v40  ;;  %v515_v40 = vperm.slane %v1186_v27, 4 }
 0x267   :  { %v387_v2 = vmul.f32 %v386_v61, %v385_v0 }
 0x269   :  { %v389_v4 = vadd.f32 %v388_v1, %v387_v2 }
 0x26b   :  { %v390_v5 = vpack.c.bf16 %v389_v4, %v389_v4 }
 0x26d   :  { %v392_v6 = vsel %vm261_vm2, %v390_v5, 0 }
 0x26e   :  { %401 = vmatpush.bf16.msrb.mxu3 %v392_v6 }
 0x271   :  { %644 = vmatmul.msk.bf16.vlgmr.msrb.gmra.mxu3 %vm257_vm3, %v1179_v21 }
 0x2f4   :  { %v403_v8 = vpop.f32.mrf.mxu3 }
 0x2f5   :  { %v407_v9 = vpack.c.bf16 %v403_v8, %v403_v8 }
 0x2f7   :  { %481 = vmatmul.bf16.vlgmr.msra.gmra.mxu1 %v407_v9 }
 0x2fc   :  { %v405_v10 = vpop.f32.mrf.mxu3 }
 0x374   :  { %v482_v12 = vpop.f32.mrf.mxu1 }
 0x375   :  { %v483_v13 = vadd.f32 %v482_v12, %v424_v11 }
 0x377   :  { %v486_v14 = vmax.f32 %v483_v13, 0.0 }
 0x379   :  { %v487_v15 = vrot.slane %v486_v14, 4 }
 0x37b   :  { %v488_v16 = vadd.f32 %v487_v15, %v486_v14 }
 0x37c   :  { %v484_v17 = vpop.f32.mrf.mxu1 }
 0x37d   :  { %v489_v18 = vrot.slane %v488_v16, 2 }
 0x37f   :  { %v490_v19 = vadd.f32 %v489_v18, %v488_v16 }
 0x381   :  { %v491_v20 = vrot.slane %v490_v19, 1 }
 0x383   :  { %v492_v22 = vadd.f32 %v491_v20, %v490_v19 }
 0x385   :  { %v493_v23 = vmul.f32 0.125, %v492_v22 }
 0x387   :  { %v494_v21 = vsub.f32 %v486_v14, %v493_v23 }
 0x389   :  { %v495_v24 = vmul.f32 %v494_v21, %v494_v21 }
 0x38b   :  { %v496_v25 = vrot.slane %v495_v24, 4 }
 0x38d   :  { %v497_v26 = vadd.f32 %v496_v25, %v495_v24 }
 0x38f   :  { %v498_v28 = vrot.slane %v497_v26, 2 }
 0x391   :  { %v499_v29 = vadd.f32 %v498_v28, %v497_v26 }
 0x393   :  { %v500_v30 = vrot.slane %v499_v29, 1 }
 0x395   :  { %v501_v31 = vadd.f32 %v500_v30, %v499_v29 }
 0x397   :  { %v502_v32 = vmul.f32 0.125, %v501_v31 }
 0x399   :  { %v503_v33 = vadd.f32 1e-05, %v502_v32 }
 0x39b   :  { %720 = vrsqrt.f32 %v503_v33  ;;  %vm510_vm8 = vweird.f32 %v503_v33 }
 0x3a1   :  { %v721_v34 = vpop.eup %720 }
 0x3a2   :  { %v505_v35 = vmul.f32 %v721_v34, %v503_v33  ;;  %vm511_vm7 = vweird.f32 %v721_v34 }
 0x3a3   :  { %vm512_vm9 = vmor %vm510_vm8, %vm511_vm7 }
 0x3a4   :  { %v506_v36 = vmul.f32 %v721_v34, %v505_v35 }
 0x3a6   :  { %v507_v37 = vmul.f32 0.5, %v506_v36 }
 0x3a8   :  { %v508_v38 = vsub.f32 1.5, %v507_v37 }
 0x3aa   :  { %v509_v39 = vmul.f32 %v721_v34, %v508_v38 }
 0x3ac   :  { %v513_v41 = vsel %vm512_vm9, %v721_v34, %v509_v39 }
 0x3ad   :  { %v514_v42 = vmul.f32 %v513_v41, %v494_v21 }
 0x3af   :  { %v516_v44 = vmul.f32 %v515_v40, %v514_v42 }
 0x3b1   :  { %v518_v45 = vadd.f32 %v517_v43, %v516_v44 }
 0x3b3   :  { %519 = vst [vmem:[#allocation11] sm:$0xff] %v518_v45 }
 0x3b4   :  { %530 = dma.vmem_to_hbm [thread:$0]  %s526_s8, 128, %s528_s9, [#allocation6]  }
 0x3b5   :  { %1020 = dma.done.wait [#allocation6], 128  }
 0x3b6   :  { %1021 = vsyncadd [#allocation6], 4294967168 }
 0x3b7   :  { %535 = vsyncpa [#allocation5], 1 }
 0x3b8   :  { %536 = vsyncpa [#allocation10], 1 }
 0x3b9   :  { %537 = vsyncpa [#allocation6], 1 }
 0x3ba   :  { %538 = vsyncpa [#allocation7], 1 }
 0x3bb   :  { %539 = vsyncmov [#allocation3] }
 0x3be   :  { %s540_s10 = vpop.sfrf %539 }
 0x3bf   :  { %p677_p12 = scmp.ne.s32.totalorder %s540_s10, 0 }
 0x3c1   :  { %544 = shalt.err (%p677_p12)  }
 0x3c2   :  { %546 = vsyncmov [#allocation3 + $0x1] }
 0x3c5   :  { %s547_s11 = vpop.sfrf %546 }
 0x3c6   :  { %p678_p13 = scmp.ne.s32.totalorder %s547_s11, 0 }
 0x3c8   :  { %551 = shalt.err (%p678_p13)  }
 0x3c9   :  { %553 = vsyncmov [#allocation3 + $0x2] }
 0x3cc   :  { %s554_s7 = vpop.sfrf %553 }
 0x3cd   :  { %p679_p0 = scmp.ne.s32.totalorder %s554_s7, 0 }
 0x3cf   :  { %558 = shalt.err (%p679_p0)  }
 0x3d0   :  { %560 = vsyncmov [#allocation3 + $0x3] }
 0x3d3   :  { %s561_s12 = vpop.sfrf %560 }
 0x3d4   :  { %p680_p1 = scmp.ne.s32.totalorder %s561_s12, 0 }
 0x3d6   :  { %565 = shalt.err (%p680_p1)  }
 0x3d7   :  { %567 = vsyncmov [#allocation3 + $0x4] }
 0x3da   :  { %s568_s13 = vpop.sfrf %567 }
 0x3db   :  { %p681_p2 = scmp.ne.s32.totalorder %s568_s13, 0 }
 0x3dd   :  { %572 = shalt.err (%p681_p2)  }
 0x3de   :  { %574 = vsyncmov [#allocation3 + $0x5] }
 0x3e1   :  { %s575_s0 = vpop.sfrf %574 }
 0x3e2   :  { %p682_p3 = scmp.ne.s32.totalorder %s575_s0, 0 }
 0x3e4   :  { %579 = shalt.err (%p682_p3)  }
 0x3e5   :  { %581 = vsyncmov [#allocation3 + $0x6] }
 0x3e8   :  { %s582_s24 = vpop.sfrf %581 }
 0x3e9   :  { %p683_p4 = scmp.ne.s32.totalorder %s582_s24, 0 }
 0x3eb   :  { %586 = shalt.err (%p683_p4)  }
 0x3ec   :  { %588 = vsyncmov [#allocation3 + $0x7] }
 0x3ef   :  { %s589_s15 = vpop.sfrf %588 }
 0x3f0   :  { %p684_p5 = scmp.ne.s32.totalorder %s589_s15, 0 }
 0x3f2   :  { %593 = shalt.err (%p684_p5)  }

</bundles_post_ra>
